<compile_context>
chip_gen: v6e
topology: v6e:2x2x1
jax: 0.10.0
libtpu: 0.0.40
codegen_flags: <defaults>
</compile_context>

<pallas_src>
import functools
import math

import jax
import jax.numpy as jnp
import numpy as np
from jax.experimental import pallas as pl
from jax.experimental.pallas import tpu as pltpu


def _cumsum_embed_kernel(mask_ref, tril_ref, triu_ref, embed_ref, *,
                         normalize, scale):
    """Per-batch y/x cumulative position embeds via MXU triangular matmuls."""
    H = mask_ref.shape[1]
    W = mask_ref.shape[2]
    mm_dtype = tril_ref.dtype            # bf16 (exact for 0/1 operands) or f32
    # mask is int8 (1 = padded, 0 = valid); not_mask = 1 - mask.
    not_mask = (1.0 - mask_ref[0].astype(jnp.float32)).astype(mm_dtype)  # (H, W)

    # cumsum along H:  y[i, j] = sum_{k<=i} not_mask[k, j]   (tril @ nm)
    y_embed = jnp.dot(tril_ref[...], not_mask,
                      preferred_element_type=jnp.float32)                # (H, W)
    # cumsum along W:  x[i, j] = sum_{k<=j} not_mask[i, k]   (nm @ triu)
    x_embed = jnp.dot(not_mask, triu_ref[...],
                      preferred_element_type=jnp.float32)                # (H, W)

    if normalize:
        eps = 1e-6
        # H + W reciprocals instead of 2*H*W broadcast divides.
        y_embed = y_embed * (scale / (y_embed[H - 1:H, :] + eps))
        x_embed = x_embed * (scale / (x_embed[:, W - 1:W] + eps))

    embed_ref[0, 0] = y_embed
    embed_ref[0, 1] = x_embed


def _sine_kernel(embed_ref, inv_dim_ref, phase_ref, out_ref):
    """out[c, p] = sin(embed_half[p] * inv_dim_t[c] + phase[c]) per half."""
    F = inv_dim_ref.shape[0]
    e = embed_ref[0]                  # (2, T)  flattened-spatial embeds
    y = e[0:1, :]                     # (1, T)
    x = e[1:2, :]                     # (1, T)
    inv_d = inv_dim_ref[...]          # (F, 1)  precomputed 1/dim_t
    ph = phase_ref[...]               # (F, 1)  0 (even feat) / pi/2 (odd feat)
    # dim_t[2k] == dim_t[2k+1]  =>  interleaved sin/cos == sin(arg + {0, pi/2}),
    # i.e. ONE transcendental per output element.
    out_ref[0, :F, :] = jnp.sin(y * inv_d + ph)                  # pos_y half
    out_ref[0, F:, :] = jnp.sin(x * inv_d + ph)                  # pos_x half


def _pick_spatial_tile(hw, batch, feats2, max_tile=2048):
    """Lane-dense spatial tile.

    Multiple of 128 (unmasked vector stores), never larger than the array,
    capped so the (1, 2F, T) f32 output block stays <= ~2 MiB (double-buffered
    it fits every chip's scoped VMEM), and shrunk until batch * n_tiles >= 4 so
    v7x's two TensorCores both receive parallel grid steps.
    """
    if hw < 128:
        return hw                                   # tiny map: full extent
    hw_floor = (hw // 128) * 128                    # biggest in-bounds 128-tile
    vmem_cap = max(128, ((2 * 1024 * 1024) // (feats2 * 4)) // 128 * 128)
    t = min(max_tile, vmem_cap, hw_floor)
    while t > 128 and batch * pl.cdiv(hw, t) < 4:
        t = max(128, ((t // 2) // 128) * 128)
    return t


def position_embedding_sine(x, mask, *, num_pos_feats=64, temperature=10000,
                            normalize=False, scale=None, max_spatial_tile=2048):
    """Pallas equivalent of PositionEmbeddingSine.forward.

    x:    (B, C, H, W)  -- only used for shape/device parity with the module.
    mask: (B, H, W) bool -- True where padded.
    Returns pos of shape (B, 2*num_pos_feats, H, W), float32 (NCHW).
    """
    del x  # the computation only depends on the mask.
    if scale is not None and normalize is False:
        raise ValueError('normalize should be True if scale is passed')
    if scale is None:
        scale = 2 * math.pi

    B, H, W = mask.shape
    F = num_pos_feats
    HW = H * W

    # ---- trace-time constants (hoisted out of the kernels) -------------------
    # bf16 operands are exact for 0/1 triangular matrices; MXU accumulates f32.
    mm_dtype = jnp.bfloat16 if max(H, W) <= 256 else jnp.float32
    tril_h = jnp.asarray(np.tril(np.ones((H, H), dtype=np.float32)),
                         dtype=mm_dtype)
    triu_w = jnp.asarray(np.triu(np.ones((W, W), dtype=np.float32)),
                         dtype=mm_dtype)

    idx = np.arange(F, dtype=np.float32)
    dim_t = np.float32(temperature) ** (2.0 * np.floor(idx / 2.0) / np.float32(F))
    inv_dim_t = jnp.asarray((1.0 / dim_t).astype(np.float32).reshape(F, 1))
    phase = jnp.asarray(
        np.where(np.arange(F) % 2 == 0, 0.0, np.pi / 2.0)
        .astype(np.float32).reshape(F, 1))

    mask_i8 = mask.astype(jnp.int8)   # 1 = padded, 0 = valid

    # ---- stage 1: cumulative embeds (B, 2, H, W) -----------------------------
    embed = pl.pallas_call(
        functools.partial(_cumsum_embed_kernel,
                          normalize=bool(normalize), scale=float(scale)),
        out_shape=jax.ShapeDtypeStruct((B, 2, H, W), jnp.float32),
        grid=(B,),
        in_specs=[
            pl.BlockSpec((1, H, W), lambda b: (b, 0, 0)),
            pl.BlockSpec((H, H), lambda b: (0, 0)),   # resident across grid
            pl.BlockSpec((W, W), lambda b: (0, 0)),   # resident across grid
        ],
        out_specs=pl.BlockSpec((1, 2, H, W), lambda b: (b, 0, 0, 0)),
        compiler_params=pltpu.CompilerParams(
            dimension_semantics=("parallel",)),
    )(mask_i8, tril_h, triu_w)

    embed_flat = embed.reshape(B, 2, HW)   # free (contiguous row-major) reshape

    # ---- stage 2: lane-dense single-sine expansion, NCHW-ordered -------------
    T = _pick_spatial_tile(HW, B, 2 * F, max_tile=max_spatial_tile)
    n_sp = pl.cdiv(HW, T)                  # ragged last block allowed
    out_block_bytes = 2 * F * T * 4
    vmem_limit = int(min(32 * 1024 * 1024,
                         max(16 * 1024 * 1024, 8 * out_block_bytes + (2 << 20))))

    out_flat = pl.pallas_call(
        _sine_kernel,
        out_shape=jax.ShapeDtypeStruct((B, 2 * F, HW), jnp.float32),
        grid=(B, n_sp),
        in_specs=[
            pl.BlockSpec((1, 2, T), lambda b, s: (b, 0, s)),
            pl.BlockSpec((F, 1), lambda b, s: (0, 0)),   # inv_dim_t, resident
            pl.BlockSpec((F, 1), lambda b, s: (0, 0)),   # phase, resident
        ],
        out_specs=pl.BlockSpec((1, 2 * F, T), lambda b, s: (b, 0, s)),
        compiler_params=pltpu.CompilerParams(
            dimension_semantics=("parallel", "parallel"),
            vmem_limit_bytes=vmem_limit),
    )(embed_flat, inv_dim_t, phase)

    # (B, 2F, H*W) row-major == (B, 2F, H, W) row-major -> free reshape, no
    # transpose pass over the output tensor.
    return out_flat.reshape(B, 2 * F, H, W)


def _reference_jax(mask, *, num_pos_feats=64, temperature=10000,
                   normalize=False, scale=None):
    """Pure-JAX transcription of the PyTorch forward, for verification."""
    if scale is None:
        scale = 2 * math.pi
    not_mask = (~mask).astype(jnp.float32)
    y_embed = jnp.cumsum(not_mask, axis=1)
    x_embed = jnp.cumsum(not_mask, axis=2)
    if normalize:
        eps = 1e-6
        y_embed = y_embed / (y_embed[:, -1:, :] + eps) * scale
        x_embed = x_embed / (x_embed[:, :, -1:] + eps) * scale
    dim_t = jnp.arange(num_pos_feats, dtype=jnp.float32)
    dim_t = temperature ** (2 * (dim_t // 2) / num_pos_feats)
    pos_x = x_embed[:, :, :, None] / dim_t
    pos_y = y_embed[:, :, :, None] / dim_t
    pos_x = jnp.stack(
        (jnp.sin(pos_x[:, :, :, 0::2]), jnp.cos(pos_x[:, :, :, 1::2])),
        axis=4).reshape(*pos_x.shape[:3], -1)
    pos_y = jnp.stack(
        (jnp.sin(pos_y[:, :, :, 0::2]), jnp.cos(pos_y[:, :, :, 1::2])),
        axis=4).reshape(*pos_y.shape[:3], -1)
    pos = jnp.concatenate((pos_y, pos_x), axis=3).transpose(0, 3, 1, 2)
    return pos


if __name__ == "__main__":
    key = jax.random.PRNGKey(0)
    B, C, H, W = 2, 4, 16, 16
    num_pos_feats = 64

    # Deterministic inputs.
    x = jax.random.normal(key, (B, C, H, W), dtype=jnp.float32)
    # Padding mask: True = padded. Different valid extents per batch element.
    rows = jnp.arange(H)[None, :, None]
    cols = jnp.arange(W)[None, None, :]
    valid_h = jnp.array([16, 12])[:, None, None]
    valid_w = jnp.array([16, 10])[:, None, None]
    mask = (rows >= valid_h) | (cols >= valid_w)   # (B, H, W) bool

    # Default config (normalize=False), as in the module defaults.
    pos = position_embedding_sine(x, mask, num_pos_feats=num_pos_feats)
    pos = jax.block_until_ready(pos)
    ref = _reference_jax(mask, num_pos_feats=num_pos_feats)
    assert pos.shape == (B, 2 * num_pos_feats, H, W), pos.shape
    np.testing.assert_allclose(np.asarray(pos), np.asarray(ref),
                               rtol=2e-5, atol=2e-5)

    # normalize=True path (the DETR-style configuration).
    pos_n = position_embedding_sine(x, mask, num_pos_feats=num_pos_feats,
                                    normalize=True)
    pos_n = jax.block_until_ready(pos_n)
    ref_n = _reference_jax(mask, num_pos_feats=num_pos_feats, normalize=True)
    np.testing.assert_allclose(np.asarray(pos_n), np.asarray(ref_n),
                               rtol=2e-5, atol=2e-5)

    print("KERNEL_OK")
</pallas_src>

<mosaic_0001>
module attributes {stable_mosaic.version = 11 : i64} {
  func.func @_cumsum_embed_kernel(%arg0: i32, %arg1: memref<1x16x16xi8, #tpu.memory_space<vmem>>, %arg2: memref<16x16xbf16, #tpu.memory_space<vmem>>, %arg3: memref<16x16xbf16, #tpu.memory_space<vmem>>, %arg4: memref<1x2x16x16xf32, #tpu.memory_space<vmem>>) attributes {dimension_semantics = [#tpu.dimension_semantics<parallel>], iteration_bounds = array<i64: 2>, scalar_prefetch = 0 : i64, scratch_operands = 0 : i64, tpu.core_type = #tpu.core_type<tc>, window_params = [{transform_indices = @transform_0, window_bounds = array<i64: 1, 16, 16>}, {pipeline_mode = #tpu.pipeline_mode<synchronous>, transform_indices = @transform_1, window_bounds = array<i64: 16, 16>}, {pipeline_mode = #tpu.pipeline_mode<synchronous>, transform_indices = @transform_2, window_bounds = array<i64: 16, 16>}, {transform_indices = @transform_3, window_bounds = array<i64: 1, 2, 16, 16>}]} {
    %c0 = arith.constant 0 : index
    %c0_0 = arith.constant 0 : index
    %c0_1 = arith.constant 0 : index
    %0 = vector.load %arg1[%c0, %c0_0, %c0_1] : memref<1x16x16xi8, #tpu.memory_space<vmem>>, vector<1x16x16xi8>
    %1 = vector.shape_cast %0 : vector<1x16x16xi8> to vector<16x16xi8>
    %2 = arith.sitofp %1 : vector<16x16xi8> to vector<16x16xf32>
    %cst = arith.constant 1.000000e+00 : f32
    %3 = vector.broadcast %cst : f32 to vector<16x16xf32>
    %4 = arith.subf %3, %2 : vector<16x16xf32>
    %5 = arith.truncf %4 : vector<16x16xf32> to vector<16x16xbf16>
    %c0_2 = arith.constant 0 : index
    %c0_3 = arith.constant 0 : index
    %6 = vector.load %arg2[%c0_2, %c0_3] : memref<16x16xbf16, #tpu.memory_space<vmem>>, vector<16x16xbf16>
    %cst_4 = arith.constant dense<0.000000e+00> : vector<16x16xf32>
    %7 = tpu.matmul %6, %5, %cst_4 {dimension_numbers = #tpu.dot_dimension_numbers<[1], [0], [0], [1], [0, 0, 1, 1], [], []>} : vector<16x16xbf16>, vector<16x16xbf16>, vector<16x16xf32> -> vector<16x16xf32>
    %c0_5 = arith.constant 0 : index
    %c0_6 = arith.constant 0 : index
    %8 = vector.load %arg3[%c0_5, %c0_6] : memref<16x16xbf16, #tpu.memory_space<vmem>>, vector<16x16xbf16>
    %cst_7 = arith.constant dense<0.000000e+00> : vector<16x16xf32>
    %9 = tpu.matmul %5, %8, %cst_7 {dimension_numbers = #tpu.dot_dimension_numbers<[1], [0], [0], [1], [0, 0, 1, 1], [], []>} : vector<16x16xbf16>, vector<16x16xbf16>, vector<16x16xf32> -> vector<16x16xf32>
    %c0_8 = arith.constant 0 : index
    %c0_9 = arith.constant 0 : index
    %c0_10 = arith.constant 0 : index
    %c0_11 = arith.constant 0 : index
    %10 = vector.load %arg4[%c0_8, %c0_9, %c0_10, %c0_11] : memref<1x2x16x16xf32, #tpu.memory_space<vmem>>, vector<1x1x16x16xf32>
    %11 = vector.shape_cast %10 : vector<1x1x16x16xf32> to vector<16x16xf32>
    %12 = vector.shape_cast %7 : vector<16x16xf32> to vector<1x1x16x16xf32>
    tpu.vector_store %arg4[%c0_8, %c0_9, %c0_10, %c0_11], %12 {strides = array<i32>} : memref<1x2x16x16xf32, #tpu.memory_space<vmem>>, vector<1x1x16x16xf32>,
    %c0_12 = arith.constant 0 : index
    %c1 = arith.constant 1 : index
    %c0_13 = arith.constant 0 : index
    %c0_14 = arith.constant 0 : index
    %13 = vector.load %arg4[%c0_12, %c1, %c0_13, %c0_14] : memref<1x2x16x16xf32, #tpu.memory_space<vmem>>, vector<1x1x16x16xf32>
    %14 = vector.shape_cast %13 : vector<1x1x16x16xf32> to vector<16x16xf32>
    %15 = vector.shape_cast %9 : vector<16x16xf32> to vector<1x1x16x16xf32>
    tpu.vector_store %arg4[%c0_12, %c1, %c0_13, %c0_14], %15 {strides = array<i32>} : memref<1x2x16x16xf32, #tpu.memory_space<vmem>>, vector<1x1x16x16xf32>,
    return
  }
  func.func @transform_0(%arg0: i32) -> (i32, i32, i32) {
    %c0_i32 = arith.constant 0 : i32
    %c0_i32_0 = arith.constant 0 : i32
    %c0_i32_1 = arith.constant 0 : i32
    return %arg0, %c0_i32, %c0_i32_0 : i32, i32, i32
  }
  func.func @transform_1(%arg0: i32) -> (i32, i32) {
    %c0_i32 = arith.constant 0 : i32
    %c0_i32_0 = arith.constant 0 : i32
    %c0_i32_1 = arith.constant 0 : i32
    return %c0_i32, %c0_i32_0 : i32, i32
  }
  func.func @transform_2(%arg0: i32) -> (i32, i32) {
    %c0_i32 = arith.constant 0 : i32
    %c0_i32_0 = arith.constant 0 : i32
    %c0_i32_1 = arith.constant 0 : i32
    return %c0_i32, %c0_i32_0 : i32, i32
  }
  func.func @transform_3(%arg0: i32) -> (i32, i32, i32, i32) {
    %c0_i32 = arith.constant 0 : i32
    %c0_i32_0 = arith.constant 0 : i32
    %c0_i32_1 = arith.constant 0 : i32
    %c0_i32_2 = arith.constant 0 : i32
    return %arg0, %c0_i32, %c0_i32_0, %c0_i32_1 : i32, i32, i32, i32
  }
}

</mosaic_0001>

<bundles_post_ra>
// kernel: tpu_custom_call.1
= control target key start
LH: loop header
LB: loop body
LE: loop exit
PB: predicated region body
PF: predicated region fallthrough
CT: control target
= control target key end

     0   :  { %8 = vsyncpa [#allocation3], 0  ;;  %s943_s0 = inlined_call_operand.hbm [shape: s8[2,16,16], index: 0, kind: input, shape index: {}]   ;;  %s944_s1 = inlined_call_operand.hbm [shape: bf16[16,16], index: 1, kind: input, shape index: {}]   ;;  %s945_s2 = inlined_call_operand.hbm [shape: bf16[16,16], index: 2, kind: input, shape index: {}]   ;;  %s946_s3 = inlined_call_operand.hbm [shape: f32[2,2,16,16], index: 3, kind: output, shape index: {}]  }
   0x1   :  { %10 = vsyncpa [#allocation3 + $0x1], 0 }
   0x2   :  { %11 = vsyncpa [#allocation6], 0 }
   0x3   :  { %12 = vsyncpa [#allocation4], 0 }
   0x4   :  { %14 = vsyncpa [#allocation4 + $0x1], 0  ;;  %s748_s12 = smov 0   ;;  %s750_s13 = smov 0  }
   0x5   :  { %s752_s14 = smov 0   ;;  %s754_s15 = smov 0  }
   0x6 LB: > { %s769_s16 = sadd.s32 4294967295, %s714_s15   ;;  %s443_s17 = sadd.s32 4294967294, %s714_s15   ;;  %s714_s15 = sphi %s754_s15, %s968_s15   ;;  %s710_s14 = sphi %s752_s14, %s967_s14   ;;  %s706_s13 = sphi %s750_s13, %s966_s13   ;;  %s702_s12 = sphi %s748_s12, %s965_s12  }
   0x7   : > { %p40_p0 = scmp.ne.s32.totalorder %s706_s13, %s702_s12  ;;  %p947_p1 = scmp.eq.s32.totalorder %s769_s16, 0 }
   0x8   : > { %p112_p3 = scmp.eq.s32.totalorder %s443_s17, 1  ;;  %p444_p5 = scmp.ge.s32.totalorder %s714_s15, 1 }
   0x9   : > { %p778_p4 = por %p947_p1, %p40_p0  ;;  %p119_p7 = scmp.lt.s32.totalorder %s714_s15, 3 }
   0xa   : > { %p783_p6 = por %p112_p3, %p40_p0  ;;  %s716_s21 = smov [#allocation5]  }
   0xb   : > { %s951_s18 = scalar_select %p778_p4, 1, 0 }
   0xc   : > { %s952_s19 = scalar_select %p783_p6, 1, 0 }
   0xd   : > { %p788_p8 = pnand %p444_p5, %p119_p7  ;;  %s131_s22 = sshll.u32 %s716_s21, 4  ;;  %s132_s22 = int_to_ptr.vmem [resolvable:$true] %s131_s22 }
   0xe   : > { %s717_s24 = smov [#allocation7]   ;;  %s577_s26 = scalar_lea.vmem %s132_s22, 128 }
   0xf   : > { %s953_s20 = scalar_select %p788_p8, 1, 0 }
  0x10   : > { %p501_p9 = pneg %p788_p8  ;;  %s144_s25 = sshll.u32 %s717_s24, 4  ;;  %s145_s25 = int_to_ptr.vmem [resolvable:$true] %s144_s25 }
  0x11   : > { %p578_p13 = scmp.ne.s32.totalorder %s132_s22, %s577_s26  ;;  %p585_p5 = scmp.lt.s32.totalorder %s132_s22, %s132_s22 }
  0x12   : > { %p797_p11 = pnand %p501_p9, %p947_p1  ;;  %p586_p7 = scmp.lt.s32.totalorder %s577_s26, %s577_s26 }
  0x14   : > { %p568_p12 = pneg %p797_p11  ;;  %p587_p10 = por %p586_p7, %p585_p5 }
  0x16   : > { %p580_p0 = pnand %p578_p13, %p568_p12 }
  0x18   : > { %p581_p3 = pneg %p580_p0 }
  0x1a   : > { %p588_p9 = pnand %p587_p10, %p581_p3 }
  0x1c   : > { %591 = shalt.err (!%p588_p9)
}
  0x1d   : > { %s718_s27 = smov 64   ;;  %s719_s28 = smov 4  }
  0x1e   : > { %504 = dma.hbm_to_vmem [thread:$0]  (!%p797_p11), %s944_s1, 128, %s132_s22, [#allocation6], %s718_s27, %s718_s27, %s719_s28  }
  0x1f   : > { %s603_s4 = scalar_lea.vmem %s145_s25, 128  ;;  %p611_p2 = scmp.lt.s32.totalorder %s145_s25, %s145_s25 }
  0x20   : > { %p604_p1 = scmp.ne.s32.totalorder %s145_s25, %s603_s4  ;;  %p612_p6 = scmp.lt.s32.totalorder %s603_s4, %s603_s4 }
  0x22   : > { %p606_p13 = pnand %p604_p1, %p568_p12  ;;  %p613_p5 = por %p612_p6, %p611_p2 }
  0x24   : > { %p607_p0 = pneg %p606_p13 }
  0x26   : > { %p614_p10 = pnand %p613_p5, %p607_p0 }
  0x28   : > { %617 = shalt.err (!%p614_p10)
}
  0x29   : > { %507 = dma.hbm_to_vmem [thread:$0]  (!%p797_p11), %s945_s2, 128, %s145_s25, [#allocation6], %s718_s27, %s718_s27, %s719_s28  }
  0x2a   : > { %s820_s7 = sadd.s32 1, %s714_s15   ;;  %s27_s8 = sadd.s32 1, %s710_s14 }
  0x2b   : > { %s24_s9 = ssub.s32 %s714_s15, %s820_s7  ;;  %p34_p1 = scmp.ne.s32.totalorder %s710_s14, %s706_s13 }
  0x2c   : > { %p25_p2 = scmp.eq.s32.totalorder %s24_s9, 0  ;;  %p35_p6 = scmp.eq.s32.totalorder %s714_s15, 0 }
  0x2d   : > { %p955_p12 = scmp.eq.s32.totalorder %s769_s16, 1  ;;  %p518_p7 = scmp.lt.s32.totalorder %s714_s15, 2 }
  0x2e   : > { %s836_s11 = scalar_select %p25_p2, %s710_s14, %s27_s8  }
  0x2f   : > { %p830_p3 = por %p955_p12, %p34_p1  ;;  %p36_p9 = por %p35_p6, %p34_p1 }
  0x30   : > { %s158_s17 = sand.u32 1, %s710_s14   ;;  %s467_s22 = sshll.u32 %s714_s15, 6 }
  0x31   : > { %s956_s10 = scalar_select %p830_p3, 1, 0 }
  0x32   : > { %s448_s21 = sshll.u32 %s158_s17, 2  ;;  %s843_s25 = scalar_lea.hbm %s943_s0, %s467_s22 }
  0x33   : > { %s162_s26 = scalar_lea.vmem [#allocation2], %s448_s21  ;;  %p847_p11 = pnand %p518_p7, %p36_p9 }
  0x34   : > { %s169_s27 = sshll.u32 %s162_s26, 4  ;;  %s851_s29 = scalar_lea.sflag [#allocation3], %s158_s17  ;;  %s845_s27 = int_to_ptr.vmem [resolvable:$true] %s169_s27 }
  0x35   : > { %s618_s30 = scalar_lea.hbm %s843_s25, 64  ;;  %p620_p0 = pneg %p847_p11 }
  0x36   : > { %p619_p13 = scmp.ne.s32.totalorder %s843_s25, %s618_s30  ;;  %s623_s6 = scalar_lea.hbm %s943_s0, 128 }
  0x37   : > { %p624_p1 = scmp.lt.s32.totalorder %s843_s25, %s943_s0  ;;  %p625_p2 = scmp.lt.s32.totalorder %s623_s6, %s618_s30 }
  0x38   : > { %p621_p5 = pnand %p620_p0, %p619_p13 }
  0x39   : > { %p626_p6 = por %p625_p2, %p624_p1 }
  0x3a   : > { %p622_p10 = pneg %p621_p5 }
  0x3c   : > { %p627_p12 = pnand %p626_p6, %p622_p10 }
  0x3e   : > { %630 = shalt.err (!%p627_p12)
}
  0x3f   : > { %s631_s17 = scalar_lea.vmem %s845_s27, 64  ;;  %s720_s21 = smov [#allocation2]  }
  0x40   : > { %p632_p7 = scmp.ne.s32.totalorder %s845_s27, %s631_s17  ;;  %s636_s22 = sshll.u32 %s720_s21, 4  ;;  %s637_s22 = int_to_ptr.vmem [resolvable:$false] %s636_s22 }
  0x41   : > { %s638_s23 = scalar_lea.vmem %s637_s22, 128  ;;  %p639_p5 = scmp.lt.s32.totalorder %s845_s27, %s637_s22 }
  0x42   : > { %p634_p9 = pnand %p632_p7, %p620_p0  ;;  %p640_p3 = scmp.lt.s32.totalorder %s638_s23, %s631_s17 }
  0x44   : > { %p635_p13 = pneg %p634_p9  ;;  %p641_p4 = por %p640_p3, %p639_p5 }
  0x46   : > { %p642_p8 = pnand %p641_p4, %p635_p13 }
  0x48   : > { %645 = shalt.err (!%p642_p8)
}
  0x49   : > { %s721_s24 = smov 32   ;;  %s722_s26 = smov 2  }
  0x4a   : > { %511 = dma.hbm_to_vmem [thread:$0]  (!%p847_p11), %s843_s25, 64, %s845_s27, %s851_s29, %s721_s24, %s721_s24, %s722_s26  }
  0x4b   : > { %p958_p0 = scmp.ne.s32.totalorder %s953_s20, 0 }
  0x4c   : > { %s875_s30 = sand.u32 (!%p958_p0), 1, %s706_s13   ;;  %p959_p4 = scmp.ne.s32.totalorder (!%p958_p0), %s951_s18, 0 }
  0x4d   : > { %181 = sbr.rel (%p958_p0) target bundleno = 310 (0x136), region = 32  ;;  %s452_s4 = sshll.u32 (!%p958_p0), %s875_s30, 2 }
  0x4e   : > { %s184_s5 = scalar_lea.sflag (!%p958_p0), [#allocation3], %s875_s30  ;;  %s187_s6 = scalar_lea.vmem (!%p958_p0), [#allocation2], %s452_s4 }
  0x52   : > { %689 = dma.done.wait (%p959_p4), %s184_s5, 64  }
  0x53   : > { %691 = vsyncadd (%p959_p4), %s184_s5, 4294967232  ;;  %p960_p8 = scmp.eq.s32.totalorder %s769_s16, 0 }
  0x55   : > { %693 = dma.done.wait (%p960_p8), [#allocation6], 256   ;;  %p961_p3 = pmov %p960_p8 }
  0x56   : > { %v723_v0 = vmov 0.0   ;;  %vm724_vm0 = vmmov 0   ;;  %v564_v1 = vld [vmem:[#allocation7] sm:$0xff]   ;;  %v470_v2 = vld [vmem:[%s187_s6] sm:$0xf]   ;;  %vm235_vm1 = vcmask 130048  }
  0x57   : > { %695 = vsyncadd (%p961_p3), [#allocation6], 4294967040  ;;  %483 = vmatprep.subr.bf16.mxu1 %v723_v0  ;;  %477 = vmatprep.subr.bf16.mxu0 %v723_v0  ;;  %v471_v3 = vunpack.c.0.s8 %v470_v2  ;;  %v472_v4 = vunpack.c.1.s8 %v470_v2  ;;  %v565_v10 = vld [vmem:[#allocation5] sm:$0xff]   ;;  %s455_s18 = sshll.u32 %s875_s30, 5  ;;  %s468_s27 = sshll.u32 %s769_s16, 9 }
  0x58   : > { %485 = vmatprep.mubr.msk.bf16.mxu1 %vm724_vm0, %v723_v0  ;;  %479 = vmatprep.mubr.msk.bf16.mxu0 %vm724_vm0, %v723_v0  ;;  %s217_s20 = scalar_lea.vmem [#allocation8], %s455_s18  ;;  %s899_s8 = scalar_lea.hbm %s946_s3, %s468_s27 }
  0x59   : > { %484 = vmatpush3.bf16.msra.mxu1 %v564_v1  ;;  %v223_v5 = vcvt.s32.f32 %v471_v3  ;;  %v224_v6 = vcvt.s32.f32 %v472_v4  ;;  %s351_s25 = sshll.u32 %s217_s20, 4  ;;  %s338_s16 = scalar_lea.sflag [#allocation4], %s875_s30  ;;  %s892_s25 = int_to_ptr.vmem [resolvable:$true] %s351_s25 }
  0x5a   : > { %s646_s9 = scalar_lea.vmem %s892_s25, 512  ;;  %p962_p10 = scmp.ne.s32.totalorder %s956_s10, 0 }
  0x5b   : > { %v225_v7 = vsub.f32 1.0, %v223_v5  ;;  %v226_v8 = vsub.f32 1.0, %v224_v6  ;;  %p647_p11 = scmp.ne.s32.totalorder %s892_s25, %s646_s9  ;;  %s725_s17 = smov [#allocation8]  }
  0x5c   : > { %s650_s21 = sshll.u32 %s725_s17, 4  ;;  %s651_s21 = int_to_ptr.vmem [resolvable:$false] %s650_s21 }
  0x5d   : > { %v227_v9 = vpack.c.bf16 %v226_v8, %v225_v7  ;;  %p648_p1 = pnand %p647_p11, %p962_p10  ;;  %s652_s22 = scalar_lea.vmem %s651_s21, 1024 }
  0x5e   : > { %p653_p6 = scmp.lt.s32.totalorder %s892_s25, %s651_s21  ;;  %p654_p12 = scmp.lt.s32.totalorder %s652_s22, %s646_s9 }
  0x5f   : > { %478 = vmatpush3.bf16.msra.mxu0 %v227_v9  ;;  %486 = vmatmul.mubr.msk.bf16.vlgmr.msra.gmra.mxu1 %vm235_vm1, %v227_v9  ;;  %p649_p2 = pneg %p648_p1 }
  0x60   : > { %p655_p7 = por %p654_p12, %p653_p6 }
  0x62   : > { %480 = vmatmul.mubr.msk.bf16.vlgmr.msra.gmra.mxu0 %vm235_vm1, %v565_v10  ;;  %p656_p9 = pnand %p655_p7, %p649_p2 }
 0x11f   : > { %v325_v11 = vpop.f32.mrf.mxu1 }
 0x120   : > { %460 = vst.msk [vmem:[%s217_s20 + $0x10] sm:$0xff] %vm235_vm1, %v325_v11 }
 0x121   : > { %v487_v12 = vpop.f32.mrf.mxu1 }
 0x122   : > { %v273_v13 = vpop.f32.mrf.mxu0 }
 0x123   : > { %332 = vst.msk [vmem:[%s217_s20] sm:$0xff] %vm235_vm1, %v273_v13  ;;  %v328_v14 = vpop.f32.mrf.mxu1 }
 0x124   : > { %461 = vst.msk [vmem:[%s217_s20 + $0x18] sm:$0xff] %vm235_vm1, %v328_v14  ;;  %v481_v15 = vpop.f32.mrf.mxu0 }
 0x125   : > { %v488_v16 = vpop.f32.mrf.mxu1 }
 0x126   : > { %v276_v17 = vpop.f32.mrf.mxu0 }
 0x127   : > { %333 = vst.msk [vmem:[%s217_s20 + $0x8] sm:$0xff] %vm235_vm1, %v276_v17 }
 0x128   : > { %v482_v18 = vpop.f32.mrf.mxu0 }
 0x129   : > { %659 = shalt.err (!%p656_p9)
}
 0x12a   : > { %s660_s23 = scalar_lea.hbm %s899_s8, 512  ;;  %s664_s4 = scalar_lea.hbm %s946_s3, 1024 }
 0x12b   : > { %p661_p13 = scmp.ne.s32.totalorder %s899_s8, %s660_s23  ;;  %p665_p4 = scmp.lt.s32.totalorder %s899_s8, %s946_s3 }
 0x12c   : > { %p666_p8 = scmp.lt.s32.totalorder %s664_s4, %s660_s23 }
 0x12d   : > { %p662_p5 = pnand %p661_p13, %p962_p10 }
 0x12e   : > { %p667_p3 = por %p666_p8, %p665_p4 }
 0x12f   : > { %p663_p0 = pneg %p662_p5 }
 0x131   : > { %p668_p11 = pnand %p667_p3, %p663_p0 }
 0x133   : > { %671 = shalt.err (!%p668_p11)
}
 0x134   : > { %s726_s18 = smov 128   ;;  %s727_s20 = smov 8  }
 0x135   : > { %499 = dma.vmem_to_hbm [thread:$0]  (%p962_p10), %s892_s25, 512, %s899_s8, %s338_s16, %s726_s18, %s726_s18, %s727_s20  }
 0x136 PF: > { %s366_s27 = sand.u32 1, %s702_s12   ;;  %p963_p1 = scmp.ne.s32.totalorder %s952_s19, 0 }
 0x137   : > { %p964_p2 = scmp.ge.s32.totalorder %s714_s15, 2  ;;  %s367_s28 = scalar_lea.sflag [#allocation4], %s366_s27 }
 0x139   : > { %p513_p6 = pnand %p964_p2, %p963_p1 }
 0x13b   : > { %p514_p12 = pneg %p513_p6 }
 0x13d   : > { %697 = dma.done.wait (%p514_p12), %s367_s28, 512  }
 0x13e   : > { %699 = vsyncadd (%p514_p12), %s367_s28, 4294966784  ;;  %p17_p7 = scmp.ge.s32.totalorder %s820_s7, 4   ;;  %s965_s12 = smov %s706_s13 }
 0x13f   : > { %s966_s13 = smov %s710_s14  ;;  %s967_s14 = smov %s836_s11 }
 0x140   : > { %s968_s15 = smov %s820_s7  ;;  %19 = sbr.rel (!%p17_p7) target bundleno = 6 (0x6), region = 86 }
 0x145   :  { %372 = vsyncpa [#allocation3], 1 }
 0x146   :  { %374 = vsyncpa [#allocation3 + $0x1], 1 }
 0x147   :  { %375 = vsyncpa [#allocation6], 1 }
 0x148   :  { %376 = vsyncpa [#allocation4], 1 }
 0x149   :  { %378 = vsyncpa [#allocation4 + $0x1], 1 }

</bundles_post_ra>
